<compile_context>
chip_gen: v5e
topology: v5e:2x2
jax: 0.10.0
libtpu: 0.0.40
codegen_flags: <defaults>
</compile_context>

<pallas_src>
import jax
import jax.numpy as jnp
from jax.experimental import pallas as pl
from jax.experimental.pallas import tpu as pltpu

LANE = 128      # vreg lane width
SUBLANE = 8     # f32 sublane count


def _round_up(n, m):
    return (n + m - 1) // m * m


def _make_kernel(n_layers, transfer, pre_activation):
    """Kernel factory for an MLP with n_layers Linear layers.

    Refs: x, (w0, b0), (w1, b1), ..., out.
    If pre_activation is True (hidden_shape == []), the transfer is applied to
    x before the first (and only) Linear.  Otherwise the transfer is applied
    after every Linear except the last, matching I2LModel.forward.
    """
    act = jax.nn.sigmoid if transfer == "sigmoid" else jnp.tanh

    def kernel(*refs):
        x_ref, out_ref = refs[0], refs[-1]
        wb_refs = refs[1:-1]

        h = x_ref[...]
        if pre_activation:
            # Identity input layer: transfer(x) feeds the output Linear.
            h = act(h.astype(jnp.float32))
        for li in range(n_layers):
            w_ref = wb_refs[2 * li]
            b_ref = wb_refs[2 * li + 1]
            # bf16 operands on the MXU, f32 accumulate; bias add stays f32.
            h = jnp.dot(h.astype(w_ref.dtype), w_ref[...],
                        preferred_element_type=jnp.float32) + b_ref[...]
            if li != n_layers - 1:
                h = act(h)          # f32 on VPU/EUP (v5e-safe)
        out_ref[...] = h.astype(out_ref.dtype)

    return kernel


def init_params(key, inp, hidden, out):
    """Deterministic init mimicking nn.Linear (weight [out,in], bias [out]),
    returned pre-transposed to the kernel's [in, out] layout, f32.
    hidden may be empty (single Linear inp->out)."""
    dims = [inp, *hidden, out]
    ks = jax.random.split(key, 2 * (len(dims) - 1))
    layers = []
    for li in range(len(dims) - 1):
        fan_in, fan_out = dims[li], dims[li + 1]
        bound = 1.0 / jnp.sqrt(fan_in)
        w = jax.random.uniform(ks[2 * li], (fan_out, fan_in), jnp.float32, -bound, bound)
        b = jax.random.uniform(ks[2 * li + 1], (fan_out,), jnp.float32, -bound, bound)
        layers.append((w.T, b))     # -> ([in, out], [out])
    return layers


def prepare_params(layers, compute_dtype=jnp.bfloat16):
    """Zero-pad every feature dim to a multiple of 128 (exact: zeros contribute
    nothing and padded outputs are sliced off) and cast weights to the MXU
    compute dtype.  Biases stay f32 (added after the f32 accumulate)."""
    padded = []
    for w, b in layers:
        fin, fout = w.shape
        fin_p, fout_p = _round_up(fin, LANE), _round_up(fout, LANE)
        w_p = jnp.zeros((fin_p, fout_p), compute_dtype).at[:fin, :fout].set(
            w.astype(compute_dtype))
        b_p = jnp.zeros((1, fout_p), jnp.float32).at[0, :fout].set(
            b.astype(jnp.float32))
        padded.append((w_p, b_p))
    return padded


def i2l_forward(x, padded_layers, out_features, *, transfer="sigmoid",
                pre_activation=False, batch_tile=512,
                compute_dtype=jnp.bfloat16):
    """x: [B, INP] (any float dtype); padded_layers: output of prepare_params.
    pre_activation=True corresponds to I2LModel(hidden_shape=[]) where the
    transfer is applied to raw x before the single output Linear."""
    B, INP = x.shape
    INP_p = padded_layers[0][0].shape[0]
    OUT_p = padded_layers[-1][0].shape[1]
    n_layers = len(padded_layers)

    # Batch tile: multiple of 8 sublanes; grow toward `batch_tile` rows so the
    # per-grid-step overhead (~0.35 us) and DMA setup are amortized.
    Bm = _round_up(min(batch_tile, max(B, SUBLANE)), SUBLANE)
    B_pad = _round_up(B, Bm)
    grid = (pl.cdiv(B_pad, Bm),)

    # Pad x and cast to the compute dtype up front (halves HBM traffic for the
    # dominant input at large B; same rounding as an in-kernel cast).
    x_pad = jnp.zeros((B_pad, INP_p), compute_dtype).at[:B, :INP].set(
        x.astype(compute_dtype))

    in_specs = [pl.BlockSpec((Bm, INP_p), lambda i: (i, 0))]
    args = [x_pad]
    for w, b in padded_layers:
        # Constant index_map -> weights/biases stay VMEM-resident for the
        # whole grid instead of being re-fetched every batch tile.
        in_specs.append(pl.BlockSpec(w.shape, lambda i: (0, 0)))
        in_specs.append(pl.BlockSpec(b.shape, lambda i: (0, 0)))
        args += [w, b]

    out_specs = pl.BlockSpec((Bm, OUT_p), lambda i: (i, 0))

    # VMEM budget: double-buffered x/out tiles + resident weights + margin,
    # capped below v7x's 64 MiB physical VMEM so the same source is portable.
    weight_bytes = sum(w.size * w.dtype.itemsize + b.size * 4
                       for w, b in padded_layers)
    tile_bytes = 2 * Bm * INP_p * x_pad.dtype.itemsize + 2 * Bm * OUT_p * 4
    vmem_limit = min(2 * (weight_bytes + tile_bytes) + (8 << 20), 48 << 20)

    out = pl.pallas_call(
        _make_kernel(n_layers, transfer, pre_activation),
        out_shape=jax.ShapeDtypeStruct((B_pad, OUT_p), jnp.float32),
        grid=grid,
        in_specs=in_specs,
        out_specs=out_specs,
        compiler_params=pltpu.CompilerParams(
            dimension_semantics=("parallel",),   # shard batch across TCs (v7x)
            vmem_limit_bytes=int(vmem_limit),
        ),
    )(*args)

    return out[:B, :out_features]


def i2l_reference(x, layers, transfer="sigmoid", pre_activation=False):
    act = jax.nn.sigmoid if transfer == "sigmoid" else jnp.tanh
    h = act(x) if pre_activation else x
    for li, (w, b) in enumerate(layers):
        h = h @ w + b
        if li != len(layers) - 1:
            h = act(h)
    return h


# TODO(synk): new_m() (runtime weight surgery enlarging the output layer) has
# no forward-pass equivalent; re-run prepare_params on the new weights instead.

if __name__ == "__main__":
    key = jax.random.PRNGKey(0)
    kx, kp1, kp2 = jax.random.split(key, 3)

    # Case 1: I2LModel(inp_shape=32, hidden_shape=[64, 32], out_shape=16), B=8.
    B, INP, H0, H1, OUT = 8, 32, 64, 32, 16
    x = jax.random.normal(kx, (B, INP), jnp.float32)
    layers = init_params(kp1, INP, (H0, H1), OUT)
    padded = prepare_params(layers, compute_dtype=jnp.bfloat16)
    out = jax.block_until_ready(i2l_forward(x, padded, OUT))
    ref = i2l_reference(x, layers)
    assert out.shape == (B, OUT)
    # bf16 matmul operands (f32 accumulate): tolerance loosened vs the f32 ref.
    err1 = float(jnp.max(jnp.abs(out - ref)))
    assert jnp.allclose(out, ref, atol=3e-2, rtol=3e-2), err1

    # Case 2: I2LModel(inp_shape=32, hidden_shape=[], out_shape=16) ->
    # Identity input layer, transfer(x) feeds a single output Linear.
    layers0 = init_params(kp2, INP, (), OUT)
    padded0 = prepare_params(layers0, compute_dtype=jnp.bfloat16)
    out0 = jax.block_until_ready(
        i2l_forward(x, padded0, OUT, pre_activation=True))
    ref0 = i2l_reference(x, layers0, pre_activation=True)
    assert out0.shape == (B, OUT)
    err2 = float(jnp.max(jnp.abs(out0 - ref0)))
    assert jnp.allclose(out0, ref0, atol=3e-2, rtol=3e-2), err2

    print("KERNEL_OK")
</pallas_src>

<mosaic_0001>
module attributes {stable_mosaic.version = 11 : i64} {
  func.func @kernel(%arg0: i32, %arg1: memref<8x128xbf16, #tpu.memory_space<vmem>>, %arg2: memref<128x128xbf16, #tpu.memory_space<vmem>>, %arg3: memref<1x128xf32, #tpu.memory_space<vmem>>, %arg4: memref<128x128xbf16, #tpu.memory_space<vmem>>, %arg5: memref<1x128xf32, #tpu.memory_space<vmem>>, %arg6: memref<128x128xbf16, #tpu.memory_space<vmem>>, %arg7: memref<1x128xf32, #tpu.memory_space<vmem>>, %arg8: memref<8x128xf32, #tpu.memory_space<vmem>>) attributes {dimension_semantics = [#tpu.dimension_semantics<parallel>], iteration_bounds = array<i64: 1>, scalar_prefetch = 0 : i64, scratch_operands = 0 : i64, tpu.core_type = #tpu.core_type<tc>, window_params = [{transform_indices = @transform_0, window_bounds = array<i64: 8, 128>}, {pipeline_mode = #tpu.pipeline_mode<synchronous>, transform_indices = @transform_1, window_bounds = array<i64: 128, 128>}, {pipeline_mode = #tpu.pipeline_mode<synchronous>, transform_indices = @transform_2, window_bounds = array<i64: 1, 128>}, {pipeline_mode = #tpu.pipeline_mode<synchronous>, transform_indices = @transform_3, window_bounds = array<i64: 128, 128>}, {pipeline_mode = #tpu.pipeline_mode<synchronous>, transform_indices = @transform_4, window_bounds = array<i64: 1, 128>}, {pipeline_mode = #tpu.pipeline_mode<synchronous>, transform_indices = @transform_5, window_bounds = array<i64: 128, 128>}, {pipeline_mode = #tpu.pipeline_mode<synchronous>, transform_indices = @transform_6, window_bounds = array<i64: 1, 128>}, {transform_indices = @transform_7, window_bounds = array<i64: 8, 128>}]} {
    %c0 = arith.constant 0 : index
    %c0_0 = arith.constant 0 : index
    %0 = vector.load %arg1[%c0, %c0_0] : memref<8x128xbf16, #tpu.memory_space<vmem>>, vector<8x128xbf16>
    %c0_1 = arith.constant 0 : index
    %c0_2 = arith.constant 0 : index
    %1 = vector.load %arg2[%c0_1, %c0_2] : memref<128x128xbf16, #tpu.memory_space<vmem>>, vector<128x128xbf16>
    %cst = arith.constant dense<0.000000e+00> : vector<8x128xf32>
    %2 = tpu.matmul %0, %1, %cst {dimension_numbers = #tpu.dot_dimension_numbers<[1], [0], [0], [1], [0, 0, 1, 1], [], []>} : vector<8x128xbf16>, vector<128x128xbf16>, vector<8x128xf32> -> vector<8x128xf32>
    %c0_3 = arith.constant 0 : index
    %c0_4 = arith.constant 0 : index
    %3 = vector.load %arg3[%c0_3, %c0_4] : memref<1x128xf32, #tpu.memory_space<vmem>>, vector<1x128xf32>
    %4 = vector.broadcast %3 : vector<1x128xf32> to vector<8x128xf32>
    %5 = arith.addf %2, %4 : vector<8x128xf32>
    %6 = arith.negf %5 : vector<8x128xf32>
    %7 = math.exp %6 : vector<8x128xf32>
    %cst_5 = arith.constant 1.000000e+00 : f32
    %8 = vector.broadcast %cst_5 : f32 to vector<8x128xf32>
    %9 = arith.addf %8, %7 : vector<8x128xf32>
    %10 = arith.divf %8, %9 : vector<8x128xf32>
    %11 = arith.truncf %10 : vector<8x128xf32> to vector<8x128xbf16>
    %c0_6 = arith.constant 0 : index
    %c0_7 = arith.constant 0 : index
    %12 = vector.load %arg4[%c0_6, %c0_7] : memref<128x128xbf16, #tpu.memory_space<vmem>>, vector<128x128xbf16>
    %cst_8 = arith.constant dense<0.000000e+00> : vector<8x128xf32>
    %13 = tpu.matmul %11, %12, %cst_8 {dimension_numbers = #tpu.dot_dimension_numbers<[1], [0], [0], [1], [0, 0, 1, 1], [], []>} : vector<8x128xbf16>, vector<128x128xbf16>, vector<8x128xf32> -> vector<8x128xf32>
    %c0_9 = arith.constant 0 : index
    %c0_10 = arith.constant 0 : index
    %14 = vector.load %arg5[%c0_9, %c0_10] : memref<1x128xf32, #tpu.memory_space<vmem>>, vector<1x128xf32>
    %15 = vector.broadcast %14 : vector<1x128xf32> to vector<8x128xf32>
    %16 = arith.addf %13, %15 : vector<8x128xf32>
    %17 = arith.negf %16 : vector<8x128xf32>
    %18 = math.exp %17 : vector<8x128xf32>
    %cst_11 = arith.constant 1.000000e+00 : f32
    %19 = vector.broadcast %cst_11 : f32 to vector<8x128xf32>
    %20 = arith.addf %19, %18 : vector<8x128xf32>
    %21 = arith.divf %19, %20 : vector<8x128xf32>
    %22 = arith.truncf %21 : vector<8x128xf32> to vector<8x128xbf16>
    %c0_12 = arith.constant 0 : index
    %c0_13 = arith.constant 0 : index
    %23 = vector.load %arg6[%c0_12, %c0_13] : memref<128x128xbf16, #tpu.memory_space<vmem>>, vector<128x128xbf16>
    %cst_14 = arith.constant dense<0.000000e+00> : vector<8x128xf32>
    %24 = tpu.matmul %22, %23, %cst_14 {dimension_numbers = #tpu.dot_dimension_numbers<[1], [0], [0], [1], [0, 0, 1, 1], [], []>} : vector<8x128xbf16>, vector<128x128xbf16>, vector<8x128xf32> -> vector<8x128xf32>
    %c0_15 = arith.constant 0 : index
    %c0_16 = arith.constant 0 : index
    %25 = vector.load %arg7[%c0_15, %c0_16] : memref<1x128xf32, #tpu.memory_space<vmem>>, vector<1x128xf32>
    %26 = vector.broadcast %25 : vector<1x128xf32> to vector<8x128xf32>
    %27 = arith.addf %24, %26 : vector<8x128xf32>
    %c0_17 = arith.constant 0 : index
    %c0_18 = arith.constant 0 : index
    %28 = vector.load %arg8[%c0_17, %c0_18] : memref<8x128xf32, #tpu.memory_space<vmem>>, vector<8x128xf32>
    tpu.vector_store %arg8[%c0_17, %c0_18], %27 {strides = array<i32>} : memref<8x128xf32, #tpu.memory_space<vmem>>, vector<8x128xf32>,
    return
  }
  func.func @transform_0(%arg0: i32) -> (i32, i32) {
    %c0_i32 = arith.constant 0 : i32
    %c0_i32_0 = arith.constant 0 : i32
    return %arg0, %c0_i32 : i32, i32
  }
  func.func @transform_1(%arg0: i32) -> (i32, i32) {
    %c0_i32 = arith.constant 0 : i32
    %c0_i32_0 = arith.constant 0 : i32
    %c0_i32_1 = arith.constant 0 : i32
    return %c0_i32, %c0_i32_0 : i32, i32
  }
  func.func @transform_2(%arg0: i32) -> (i32, i32) {
    %c0_i32 = arith.constant 0 : i32
    %c0_i32_0 = arith.constant 0 : i32
    %c0_i32_1 = arith.constant 0 : i32
    return %c0_i32, %c0_i32_0 : i32, i32
  }
  func.func @transform_3(%arg0: i32) -> (i32, i32) {
    %c0_i32 = arith.constant 0 : i32
    %c0_i32_0 = arith.constant 0 : i32
    %c0_i32_1 = arith.constant 0 : i32
    return %c0_i32, %c0_i32_0 : i32, i32
  }
  func.func @transform_4(%arg0: i32) -> (i32, i32) {
    %c0_i32 = arith.constant 0 : i32
    %c0_i32_0 = arith.constant 0 : i32
    %c0_i32_1 = arith.constant 0 : i32
    return %c0_i32, %c0_i32_0 : i32, i32
  }
  func.func @transform_5(%arg0: i32) -> (i32, i32) {
    %c0_i32 = arith.constant 0 : i32
    %c0_i32_0 = arith.constant 0 : i32
    %c0_i32_1 = arith.constant 0 : i32
    return %c0_i32, %c0_i32_0 : i32, i32
  }
  func.func @transform_6(%arg0: i32) -> (i32, i32) {
    %c0_i32 = arith.constant 0 : i32
    %c0_i32_0 = arith.constant 0 : i32
    %c0_i32_1 = arith.constant 0 : i32
    return %c0_i32, %c0_i32_0 : i32, i32
  }
  func.func @transform_7(%arg0: i32) -> (i32, i32) {
    %c0_i32 = arith.constant 0 : i32
    %c0_i32_0 = arith.constant 0 : i32
    return %arg0, %c0_i32 : i32, i32
  }
}

</mosaic_0001>

<bundles_post_ra>
// kernel: tpu_custom_call.1
= control target key start
LH: loop header
LB: loop body
LE: loop exit
PB: predicated region body
PF: predicated region fallthrough
CT: control target
= control target key end

     0   :  { %12 = vsyncpa [#allocation3], 0  ;;  %s731_s0 = inlined_call_operand.hbm [shape: bf16[8,128], index: 0, kind: input, shape index: {}]   ;;  %s732_s1 = inlined_call_operand.hbm [shape: bf16[128,128], index: 1, kind: input, shape index: {}]   ;;  %s733_s2 = inlined_call_operand.vmem [shape: f32[1,128], index: 2, kind: input, shape index: {}]   ;;  %s734_s3 = inlined_call_operand.hbm [shape: bf16[128,128], index: 3, kind: input, shape index: {}]   ;;  %s735_s4 = inlined_call_operand.vmem [shape: f32[1,128], index: 4, kind: input, shape index: {}]   ;;  %s736_s5 = inlined_call_operand.hbm [shape: bf16[128,128], index: 5, kind: input, shape index: {}]   ;;  %s737_s6 = inlined_call_operand.vmem [shape: f32[1,128], index: 6, kind: input, shape index: {}]   ;;  %s738_s7 = inlined_call_operand.hbm [shape: f32[8,128], index: 7, kind: output, shape index: {}]  }
   0x1   :  { %13 = vsyncpa [#allocation6], 0 }
   0x2   :  { %14 = vsyncpa [#allocation9], 0  ;;  %s31_s26 = sshll.u32 %s732_s1, 4  ;;  %s32_s26 = int_to_ptr.hbm [resolvable:$true] %s31_s26 }
   0x3   :  { %15 = vsyncpa [#allocation4], 0  ;;  %s660_s27 = smov [#allocation5]   ;;  %s21_s8 = sshll.u32 %s731_s0, 4  ;;  %s22_s8 = int_to_ptr.hbm [resolvable:$true] %s21_s8 }
   0x4   :  { %s33_s28 = sshll.u32 %s660_s27, 4  ;;  %s661_s9 = smov 64   ;;  %s34_s28 = int_to_ptr.vmem [resolvable:$true] %s33_s28 }
   0x5   :  { %s662_s10 = smov 4   ;;  %s663_s11 = smov [#allocation2]  }
   0x6   :  { %39 = dma.hbm_to_vmem [thread:$0]  %s32_s26, 1024, %s34_s28, [#allocation6], %s661_s9, %s661_s9, %s662_s10  }
   0x7   :  { %s23_s12 = sshll.u32 %s663_s11, 4  ;;  %s46_s15 = sshll.u32 %s734_s3, 4  ;;  %s24_s12 = int_to_ptr.vmem [resolvable:$true] %s23_s12  ;;  %s47_s15 = int_to_ptr.hbm [resolvable:$true] %s46_s15 }
   0x8   :  { %26 = dma.hbm_to_vmem [thread:$0]  %s22_s8, 64, %s24_s12, [#allocation3]  }
   0x9   :  { %s61_s17 = sshll.u32 %s736_s5, 4  ;;  %s664_s18 = smov [#allocation7]   ;;  %s62_s17 = int_to_ptr.hbm [resolvable:$true] %s61_s17 }
   0xa   :  { %s48_s19 = sshll.u32 %s664_s18, 4  ;;  %s665_s0 = smov [#allocation8]   ;;  %s49_s19 = int_to_ptr.vmem [resolvable:$true] %s48_s19 }
   0xb   :  { %54 = dma.hbm_to_vmem [thread:$0]  %s47_s15, 1024, %s49_s19, [#allocation6], %s661_s9, %s661_s9, %s662_s10  }
   0xc   :  { %s63_s20 = sshll.u32 %s665_s0, 4  ;;  %s64_s20 = int_to_ptr.vmem [resolvable:$true] %s63_s20 }
   0xd   :  { %69 = dma.hbm_to_vmem [thread:$0]  %s62_s17, 1024, %s64_s20, [#allocation9], %s661_s9, %s661_s9, %s662_s10  }
   0xe   :  { %652 = dma.done.wait [#allocation3], 64  }
   0xf   :  { %653 = vsyncadd [#allocation3], 4294967232 }
  0x10   :  { %654 = dma.done.wait [#allocation6], 2048  }
  0x11   :  { %655 = vsyncadd [#allocation6], 4294965248 }
  0x12   :  { %656 = dma.done.wait [#allocation9], 1024  }
  0x13   :  { %657 = vsyncadd [#allocation9], 4294966272  ;;  %v497_v0 = vld [vmem:[#allocation5 + $0x38] sm:$0xff]  ;;  %v496_v1 = vld [vmem:[#allocation5 + $0x30] sm:$0xff]  ;;  %s666_s23 = smov [#allocation10]   ;;  %s380_s27 = sshll.u32 %s738_s7, 4  ;;  %s381_s27 = int_to_ptr.hbm [resolvable:$true] %s380_s27 }
  0x14   :  { %157 = vmatpush.bf16.msra.mxu0 %v497_v0  ;;  %v495_v2 = vld [vmem:[#allocation5 + $0x28] sm:$0xff]  ;;  %v494_v3 = vld [vmem:[#allocation5 + $0x20] sm:$0xff]  ;;  %v493_v4 = vld [vmem:[#allocation5 + $0x18] sm:$0xff]  ;;  %s378_s24 = sshll.u32 %s666_s23, 4  ;;  %s379_s24 = int_to_ptr.vmem [resolvable:$true] %s378_s24 }
  0x15   :  { %v492_v5 = vld [vmem:[#allocation5 + $0x10] sm:$0xff]  ;;  %v491_v6 = vld [vmem:[#allocation5 + $0x8] sm:$0xff]  ;;  %v490_v7 = vld [vmem:[#allocation5] sm:$0xff] }
  0x16   :  { %v88_v8 = vld [vmem:[#allocation2] sm:$0xf]  ;;  %v504_v10 = vld [vmem:[#allocation7 + $0x30] sm:$0xff]  ;;  %v503_v11 = vld [vmem:[#allocation7 + $0x28] sm:$0xff] }
  0x17   :  { %v505_v9 = vld [vmem:[#allocation7 + $0x38] sm:$0xff]  ;;  %v502_v12 = vld [vmem:[#allocation7 + $0x20] sm:$0xff]  ;;  %v500_v14 = vld [vmem:[#allocation7 + $0x10] sm:$0xff] }
  0x18   :  { %158 = vmatpush.bf16.msra.mxu0 %v496_v1  ;;  %258 = vmatpush.bf16.msra.mxu1 %v505_v9  ;;  %v501_v13 = vld [vmem:[#allocation7 + $0x18] sm:$0xff]  ;;  %v499_v15 = vld [vmem:[#allocation7 + $0x8] sm:$0xff]  ;;  %v498_v16 = vld [vmem:[#allocation7] sm:$0xff] }
  0x19   :  { %v521_v17 = vld [vmem:[%s733_s2] ss:$0 sm:$0xff]  ;;  %v512_v36 = vld [vmem:[#allocation8 + $0x30] sm:$0xff]  ;;  %v511_v37 = vld [vmem:[#allocation8 + $0x28] sm:$0xff] }
  0x1a   :  { %v513_v35 = vld [vmem:[#allocation8 + $0x38] sm:$0xff]  ;;  %v510_v38 = vld [vmem:[#allocation8 + $0x20] sm:$0xff]  ;;  %v508_v40 = vld [vmem:[#allocation8 + $0x10] sm:$0xff] }
  0x1b   :  { %359 = vmatpush.bf16.msra.mxu2 %v513_v35  ;;  %v509_v39 = vld [vmem:[#allocation8 + $0x18] sm:$0xff]  ;;  %v507_v41 = vld [vmem:[#allocation8 + $0x8] sm:$0xff]  ;;  %v506_v42 = vld [vmem:[#allocation8] sm:$0xff] }
  0x1c   :  { %159 = vmatpush.bf16.msra.mxu0 %v495_v2  ;;  %259 = vmatpush.bf16.msra.mxu1 %v504_v10  ;;  %v522_v43 = vld [vmem:[%s735_s4] ss:$0 sm:$0xff] }
  0x1d   :  { %v523_v61 = vld [vmem:[%s737_s6] ss:$0 sm:$0xff] }
  0x1f   :  { %360 = vmatpush.bf16.msra.mxu2 %v512_v36 }
  0x20   :  { %160 = vmatpush.bf16.msra.mxu0 %v494_v3  ;;  %260 = vmatpush.bf16.msra.mxu1 %v503_v11 }
  0x23   :  { %361 = vmatpush.bf16.msra.mxu2 %v511_v37 }
  0x24   :  { %161 = vmatpush.bf16.msra.mxu0 %v493_v4  ;;  %261 = vmatpush.bf16.msra.mxu1 %v502_v12 }
  0x27   :  { %362 = vmatpush.bf16.msra.mxu2 %v510_v38 }
  0x28   :  { %162 = vmatpush.bf16.msra.mxu0 %v492_v5  ;;  %262 = vmatpush.bf16.msra.mxu1 %v501_v13 }
  0x2b   :  { %363 = vmatpush.bf16.msra.mxu2 %v509_v39 }
  0x2c   :  { %163 = vmatpush.bf16.msra.mxu0 %v491_v6  ;;  %263 = vmatpush.bf16.msra.mxu1 %v500_v14 }
  0x2f   :  { %364 = vmatpush.bf16.msra.mxu2 %v508_v40 }
  0x30   :  { %164 = vmatpush.bf16.msra.mxu0 %v490_v7  ;;  %264 = vmatpush.bf16.msra.mxu1 %v499_v15 }
  0x33   :  { %165 = vmatmul.bf16.vlgmr.msra.gmra.mxu0 %v88_v8  ;;  %365 = vmatpush.bf16.msra.mxu2 %v507_v41 }
  0x34   :  { %265 = vmatpush.bf16.msra.mxu1 %v498_v16 }
  0x37   :  { %366 = vmatpush.bf16.msra.mxu2 %v506_v42 }
  0xb0   :  { %v166_v18 = vpop.f32.mrf.mxu0 }
  0xb1   :  { %v167_v19 = vadd.f32 %v521_v17, %v166_v18 }
  0xb3   :  { %v424_v20 = vmul.f32 -1.442695, %v167_v19 }
  0xb5   :  { %524 = vpow2.f32 %v424_v20 }
  0xb8   :  { %v168_v21 = vpop.f32.mrf.mxu0 }
  0xbb   :  { %v525_v22 = vpop.eup %524 }
  0xbc   :  { %v173_v23 = vadd.f32 1.0, %v525_v22 }
  0xbe   :  { %526 = vrcp.f32 %v173_v23  ;;  %v185_v27 = vand.u32 2147483648, %v173_v23  ;;  %v183_v29 = vand.u32 2147483647, %v173_v23  ;;  %vm179_vm1 = vweird.f32 %v173_v23 }
  0xc0   :  { %v186_v31 = vor.u32 1.1754944e-38, %v185_v27  ;;  %vm184_vm3 = vcmp.eq.f32.partialorder %v183_v29, 8.507059e+37 }
  0xc4   :  { %v527_v24 = vpop.eup %526 }
  0xc5   :  { %v175_v25 = vmul.f32 %v527_v24, %v173_v23  ;;  %vm180_vm0 = vweird.f32 %v527_v24 }
  0xc6   :  { %vm181_vm2 = vmor %vm179_vm1, %vm180_vm0 }
  0xc7   :  { %v176_v26 = vsub.f32 1.0, %v175_v25 }
  0xc9   :  { %v177_v28 = vmul.f32 %v527_v24, %v176_v26 }
  0xcb   :  { %v178_v30 = vadd.f32 %v527_v24, %v177_v28 }
  0xcd   :  { %v182_v32 = vsel %vm181_vm2, %v527_v24, %v178_v30 }
  0xce   :  { %v187_v33 = vsel %vm184_vm3, %v186_v31, %v182_v32 }
  0xcf   :  { %v189_v34 = vpack.c.bf16 %v187_v33, %v187_v33 }
  0xd1   :  { %266 = vmatmul.bf16.vlgmr.msra.gmra.mxu1 %v189_v34 }
 0x14e   :  { %v267_v44 = vpop.f32.mrf.mxu1 }
 0x14f   :  { %v268_v45 = vadd.f32 %v522_v43, %v267_v44 }
 0x151   :  { %v457_v46 = vmul.f32 -1.442695, %v268_v45 }
 0x153   :  { %528 = vpow2.f32 %v457_v46 }
 0x156   :  { %v269_v47 = vpop.f32.mrf.mxu1 }
 0x159   :  { %v529_v48 = vpop.eup %528 }
 0x15a   :  { %v274_v49 = vadd.f32 1.0, %v529_v48 }
 0x15c   :  { %530 = vrcp.f32 %v274_v49  ;;  %v286_v53 = vand.u32 2147483648, %v274_v49  ;;  %v284_v55 = vand.u32 2147483647, %v274_v49  ;;  %vm280_vm5 = vweird.f32 %v274_v49 }
 0x15e   :  { %v287_v57 = vor.u32 1.1754944e-38, %v286_v53  ;;  %vm285_vm7 = vcmp.eq.f32.partialorder %v284_v55, 8.507059e+37 }
 0x162   :  { %v531_v50 = vpop.eup %530 }
 0x163   :  { %v276_v51 = vmul.f32 %v531_v50, %v274_v49  ;;  %vm281_vm4 = vweird.f32 %v531_v50 }
 0x164   :  { %vm282_vm6 = vmor %vm280_vm5, %vm281_vm4 }
 0x165   :  { %v277_v52 = vsub.f32 1.0, %v276_v51 }
 0x167   :  { %v278_v54 = vmul.f32 %v531_v50, %v277_v52 }
 0x169   :  { %v279_v56 = vadd.f32 %v531_v50, %v278_v54 }
 0x16b   :  { %v283_v58 = vsel %vm282_vm6, %v531_v50, %v279_v56 }
 0x16c   :  { %v288_v59 = vsel %vm285_vm7, %v287_v57, %v283_v58 }
 0x16d   :  { %v290_v60 = vpack.c.bf16 %v288_v59, %v288_v59 }
 0x16f   :  { %367 = vmatmul.bf16.vlgmr.msra.gmra.mxu2 %v290_v60 }
 0x1f2   :  { %v368_v62 = vpop.f32.mrf.mxu2 }
 0x1f3   :  { %v369_v63 = vadd.f32 %v523_v61, %v368_v62 }
 0x1f5   :  { %372 = vst [vmem:[#allocation10] sm:$0xff] %v369_v63 }
 0x1f6   :  { %383 = dma.vmem_to_hbm [thread:$0]  %s379_s24, 128, %s381_s27, [#allocation4]  }
 0x1fa   :  { %v370_v0 = vpop.f32.mrf.mxu2 }
 0x1fb   :  { %658 = dma.done.wait [#allocation4], 128  }
 0x1fc   :  { %659 = vsyncadd [#allocation4], 4294967168 }
 0x1fd   :  { %388 = vsyncpa [#allocation3], 1 }
 0x1fe   :  { %389 = vsyncpa [#allocation6], 1 }
 0x1ff   :  { %390 = vsyncpa [#allocation9], 1 }
 0x200   :  { %391 = vsyncpa [#allocation4], 1 }

</bundles_post_ra>
